<compile_context>
chip_gen: v7x
topology: tpu7x:2x2x1
jax: 0.10.0
libtpu: 0.0.40
codegen_flags: <defaults>
</compile_context>

<pallas_src>
import jax
import jax.numpy as jnp
from jax.experimental import pallas as pl
from jax.experimental.pallas import tpu as pltpu

# ---- Hyperparameters (the globals the PyTorch module's __init__ relies on) ----
VOCAB_SIZE = 32
EMBEDDING_SIZE = 16
SEQUENCE_LENGTH = 8
FILTER_SIZES = (2, 3, 4)
NUM_FILTERS = 4
NUM_CLASSES = 3
NUM_FILTERS_TOTAL = NUM_FILTERS * len(FILTER_SIZES)      # 12
BATCH = 2

MAX_FS = max(FILTER_SIZES)                               # 4 taps in the padded im2col slab
T_MAX = SEQUENCE_LENGTH - min(FILTER_SIZES) + 1          # 7 valid time positions
T_PAD = 8                                                # padded to one full 8-sublane group
K_SLAB = MAX_FS * VOCAB_SIZE                             # 128 (lane-aligned contraction dim)
F_PAD = 16                                               # conv-output columns padded 12 -> 16
ONES_COL = F_PAD - 1                                     # pooled[:, 15] == 1.0 -> carries Bias
# Sentinel for out-of-sequence taps: must lie outside [VOCAB_SIZE*(1-MAX_FS), K_SLAB-1]
# = [-96, 127] so `sentinel == lane - VOCAB_SIZE*k` can never hold for any lane.
SENTINEL = -(1 << 30)

# Per-grid-step batch tile.  At toy size one tile covers the whole batch (grid == (1,)).
# TODO(synk): at real batch sizes use TILE_B of 64-256, keep dimension_semantics=
# ("parallel",) so v7x's 2nd TensorCore is used, size tiles against v7x's 64 MiB VMEM
# (set vmem_limit_bytes if going big), and emit a lane-dense pooled [TILE_B, F_PAD]
# output (tiny final linear in XLA) to avoid per-step masked vst of 3-wide rows.
TILE_B = BATCH

assert T_PAD % 8 == 0 and T_PAD >= T_MAX
assert F_PAD >= NUM_FILTERS_TOTAL + 1
assert BATCH % TILE_B == 0


def textcnn_kernel(idx_ref, w_ref, bm_ref, out_ref):
    """One-hot im2col -> fused conv matmul -> bias/mask + relu -> max-pool -> linear(+Bias)."""
    rows = TILE_B * T_PAD
    idx = idx_ref[...]                                                  # [rows, MAX_FS] int32

    # One-hot im2col slab via a single full-width compare-and-sum (pure VPU, no lane
    # concat): lane l in band k (l in [32k, 32k+32)) is 1 iff idx[:, k] == l - 32k.
    # Token values 0..31 only ever match inside their own band; SENTINEL matches nothing.
    lane = jax.lax.broadcasted_iota(jnp.int32, (rows, K_SLAB), 1)
    one, zero = jnp.float32(1.0), jnp.float32(0.0)
    slab = jnp.where(idx[:, 0:1] == lane, one, zero)
    for k in range(1, MAX_FS):
        slab = slab + jnp.where(idx[:, k:k + 1] == (lane - VOCAB_SIZE * k), one, zero)
    slab = slab.astype(jnp.bfloat16)                                    # [rows, 128] bf16

    # Embedding + every conv branch in one MXU matmul (f32 accumulate).  Columns 12..15
    # of the packed weight are zero, so conv[:, 12:16] == 0 exactly.
    conv = jnp.dot(slab, w_ref[0:K_SLAB, :],
                   preferred_element_type=jnp.float32)                  # [rows, F_PAD] f32

    # One [T_PAD, F_PAD] bias/mask block shared by every batch row-group: conv bias on
    # valid (t, branch) entries, -1e30 on invalid/pad rows (ReLU -> 0, harmless to max),
    # +1.0 in ONES_COL so pooled[:, ONES_COL] == 1 and carries the class Bias.
    bm = bm_ref[...]                                                    # [T_PAD, F_PAD] f32
    pooled_rows = []
    for b in range(TILE_B):                                             # 8-row aligned groups
        h = jnp.maximum(conv[b * T_PAD:(b + 1) * T_PAD, :] + bm, 0.0)   # [T_PAD, F_PAD]
        pooled_rows.append(jnp.max(h, axis=0, keepdims=True))           # [1, F_PAD]
    pooled = jnp.concatenate(pooled_rows, axis=0)                       # [TILE_B, F_PAD]

    # Final linear: rows 0..11 of this block are W_lin, row ONES_COL is the Bias, the rest
    # is zero (multiplied by exactly-zero pooled columns).  Tiny dot; do NOT pad to 128.
    wlin = w_ref[K_SLAB:K_SLAB + F_PAD, :]                              # [F_PAD, F_PAD] bf16
    res = jnp.dot(pooled.astype(jnp.bfloat16), wlin,
                  preferred_element_type=jnp.float32)                   # [TILE_B, F_PAD]
    out_ref[...] = res[:, :NUM_CLASSES]


def textcnn_pallas(idx2d, w_pack, biasmask):
    rows = TILE_B * T_PAD
    grid = (pl.cdiv(BATCH, TILE_B),)
    flops = 2 * BATCH * T_PAD * K_SLAB * F_PAD + 2 * BATCH * F_PAD * F_PAD
    bytes_accessed = (idx2d.size * 4 + w_pack.size * 2 + biasmask.size * 4
                      + BATCH * NUM_CLASSES * 4)
    return pl.pallas_call(
        textcnn_kernel,
        out_shape=jax.ShapeDtypeStruct((BATCH, NUM_CLASSES), jnp.float32),
        grid_spec=pltpu.PrefetchScalarGridSpec(
            num_scalar_prefetch=0,
            grid=grid,
            in_specs=[
                pl.BlockSpec((rows, MAX_FS), lambda i: (i, 0)),           # per-tile token taps
                pl.BlockSpec((K_SLAB + F_PAD, F_PAD), lambda i: (0, 0)),  # resident packed weights
                pl.BlockSpec((T_PAD, F_PAD), lambda i: (0, 0)),           # resident bias/mask block
            ],
            out_specs=pl.BlockSpec((TILE_B, NUM_CLASSES), lambda i: (i, 0)),
        ),
        compiler_params=pltpu.CompilerParams(dimension_semantics=("parallel",)),
        cost_estimate=pl.CostEstimate(flops=flops, transcendentals=0,
                                      bytes_accessed=bytes_accessed),
    )(idx2d, w_pack, biasmask)


@jax.jit
def textcnn_forward(x_tokens, params):
    """Tiny XLA-side parameter/index packing, then one fused Pallas kernel (3 input DMAs)."""
    W_emb = params["W_emb"]

    # ---- Packed weight [K_SLAB + F_PAD, F_PAD] bf16: conv block on top, linear block below.
    # Conv block: W_emb folded into every conv tap; taps k >= fs of a branch are zero rows.
    col_blocks = []
    for i, fs in enumerate(FILTER_SIZES):
        row_blocks = []
        for k in range(MAX_FS):
            if k < fs:
                row_blocks.append(W_emb @ params["conv_w"][i][k])            # [V, F]
            else:
                row_blocks.append(jnp.zeros((VOCAB_SIZE, NUM_FILTERS), jnp.float32))
        col_blocks.append(jnp.concatenate(row_blocks, axis=0))               # [K_SLAB, F]
    wc = jnp.concatenate(col_blocks, axis=1)                                 # [128, 12]
    wc = jnp.pad(wc, ((0, 0), (0, F_PAD - NUM_FILTERS_TOTAL)))               # [128, 16]

    wlin = jnp.zeros((F_PAD, F_PAD), jnp.float32)
    wlin = wlin.at[:NUM_FILTERS_TOTAL, :NUM_CLASSES].set(params["W_lin"])
    wlin = wlin.at[ONES_COL, :NUM_CLASSES].set(params["B_lin"].reshape(-1))  # Bias row
    w_pack = jnp.concatenate([wc, wlin], axis=0).astype(jnp.bfloat16)        # [144, 16]

    # ---- Bias / valid-row mask block [T_PAD, F_PAD] f32 (shared by all batch rows).
    bias_row = jnp.concatenate(
        [b.reshape(1, NUM_FILTERS) for b in params["conv_b"]], axis=1)       # [1, 12]
    limits = jnp.repeat(
        jnp.asarray([SEQUENCE_LENGTH - fs + 1 for fs in FILTER_SIZES], jnp.int32),
        NUM_FILTERS)                                                         # [12]
    valid = jnp.arange(T_PAD, dtype=jnp.int32)[:, None] < limits[None, :]    # [T_PAD, 12]
    bm_conv = jnp.where(valid, bias_row, jnp.float32(-1e30))                 # [T_PAD, 12]
    bm_dead = jnp.full((T_PAD, F_PAD - NUM_FILTERS_TOTAL - 1), -1e30, jnp.float32)
    bm_ones = jnp.ones((T_PAD, 1), jnp.float32)                              # ONES_COL
    biasmask = jnp.concatenate([bm_conv, bm_dead, bm_ones], axis=1)          # [T_PAD, 16]

    # ---- im2col on the int32 token ids only; out-of-sequence taps get SENTINEL.
    pad = T_PAD + MAX_FS - 1 - SEQUENCE_LENGTH
    tok_pad = jnp.concatenate(
        [x_tokens.astype(jnp.int32),
         jnp.full((BATCH, pad), SENTINEL, jnp.int32)], axis=1)               # [B, S+pad]
    taps = jnp.arange(T_PAD)[:, None] + jnp.arange(MAX_FS)[None, :]          # [T_PAD, MAX_FS]
    idx2d = tok_pad[:, taps].reshape(BATCH * T_PAD, MAX_FS)                  # [B*T_PAD, MAX_FS]

    return textcnn_pallas(idx2d, w_pack, biasmask)


def reference_forward(x_tokens, params):
    """Pure-JAX f32 re-implementation of the PyTorch forward for validation."""
    emb = params["W_emb"][x_tokens].astype(jnp.float32)
    pooled_all = []
    for i, fs in enumerate(FILTER_SIZES):
        w = params["conv_w"][i]  # [fs, E, F]
        b = params["conv_b"][i]  # [1, F]
        t_out = SEQUENCE_LENGTH - fs + 1
        h = jnp.zeros((BATCH, t_out, NUM_FILTERS), jnp.float32)
        for k in range(fs):
            h = h + jnp.einsum("bte,ef->btf", emb[:, k:k + t_out, :], w[k])
        h = jax.nn.relu(h + b)
        pooled_all.append(jnp.max(h, axis=1))
    h_pool = jnp.concatenate(pooled_all, axis=-1)  # [B, F_total], matches torch cat order
    return h_pool @ params["W_lin"] + params["B_lin"]


def init_params(key):
    keys = jax.random.split(key, 2 + 2 * len(FILTER_SIZES))
    params = {
        "W_emb": jax.random.normal(keys[0], (VOCAB_SIZE, EMBEDDING_SIZE), jnp.float32) * 0.1,
        # Linear(num_filters_total, num_classes, bias=False), stored transposed.
        "W_lin": jax.random.normal(keys[1], (NUM_FILTERS_TOTAL, NUM_CLASSES), jnp.float32) * 0.1,
        # nn.Parameter(torch.ones([num_classes])), kept 2D for TPU-friendly layout.
        "B_lin": jnp.ones((1, NUM_CLASSES), jnp.float32),
        "conv_w": [],
        "conv_b": [],
    }
    for i, fs in enumerate(FILTER_SIZES):
        # Conv2d weight [F, 1, fs, E] -> stored pre-transposed as [fs, E, F].
        params["conv_w"].append(
            jax.random.normal(keys[2 + 2 * i], (fs, EMBEDDING_SIZE, NUM_FILTERS),
                              jnp.float32) * 0.1)
        params["conv_b"].append(
            jax.random.normal(keys[3 + 2 * i], (1, NUM_FILTERS), jnp.float32) * 0.1)
    return params


if __name__ == "__main__":
    key = jax.random.PRNGKey(0)
    pkey, xkey = jax.random.split(key)
    params = init_params(pkey)
    x_tokens = jax.random.randint(xkey, (BATCH, SEQUENCE_LENGTH), 0, VOCAB_SIZE,
                                  dtype=jnp.int32)

    out = textcnn_forward(x_tokens, params)
    jax.block_until_ready(out)

    ref = reference_forward(x_tokens, params)
    assert out.shape == (BATCH, NUM_CLASSES)
    # bf16 MXU inputs (f32 accumulate) vs. the all-f32 reference -> slightly looser tol.
    assert jnp.allclose(out, ref, atol=2e-2, rtol=2e-2), (out, ref)
    print("KERNEL_OK")
</pallas_src>

<mosaic_0001>
module attributes {stable_mosaic.version = 11 : i64} {
  func.func @textcnn_kernel(%arg0: i32, %arg1: memref<16x4xi32, #tpu.memory_space<vmem>>, %arg2: memref<144x16xbf16, #tpu.memory_space<vmem>>, %arg3: memref<8x16xf32, #tpu.memory_space<vmem>>, %arg4: memref<2x3xf32, #tpu.memory_space<vmem>>) attributes {dimension_semantics = [#tpu.dimension_semantics<parallel>], iteration_bounds = array<i64: 1>, scalar_prefetch = 0 : i64, scratch_operands = 0 : i64, tpu.core_type = #tpu.core_type<tc>, window_params = [{transform_indices = @transform_0, window_bounds = array<i64: 16, 4>}, {pipeline_mode = #tpu.pipeline_mode<synchronous>, transform_indices = @transform_1, window_bounds = array<i64: 144, 16>}, {pipeline_mode = #tpu.pipeline_mode<synchronous>, transform_indices = @transform_2, window_bounds = array<i64: 8, 16>}, {transform_indices = @transform_3, window_bounds = array<i64: 2, 3>}]} {
    %c0 = arith.constant 0 : index
    %c0_0 = arith.constant 0 : index
    %0 = vector.load %arg1[%c0, %c0_0] : memref<16x4xi32, #tpu.memory_space<vmem>>, vector<16x4xi32>
    %1 = tpu.iota {dimensions = array<i32: 1>} : vector<16x128xi32>
    %2 = vector.extract_strided_slice %0 {offsets = [0, 0], sizes = [16, 1], strides = [1, 1]} : vector<16x4xi32> to vector<16x1xi32>
    %3 = vector.broadcast %2 : vector<16x1xi32> to vector<16x128xi32>
    %4 = arith.cmpi eq, %3, %1 : vector<16x128xi32>
    %cst = arith.constant 1.000000e+00 : f32
    %cst_1 = arith.constant 0.000000e+00 : f32
    %5 = vector.broadcast %cst : f32 to vector<16x128xf32>
    %6 = vector.broadcast %cst_1 : f32 to vector<16x128xf32>
    %7 = arith.select %4, %5, %6 : vector<16x128xi1>, vector<16x128xf32>
    %8 = vector.extract_strided_slice %0 {offsets = [0, 1], sizes = [16, 1], strides = [1, 1]} : vector<16x4xi32> to vector<16x1xi32>
    %c32_i32 = arith.constant 32 : i32
    %9 = vector.broadcast %c32_i32 : i32 to vector<16x128xi32>
    %10 = arith.subi %1, %9 : vector<16x128xi32>
    %11 = vector.broadcast %8 : vector<16x1xi32> to vector<16x128xi32>
    %12 = arith.cmpi eq, %11, %10 : vector<16x128xi32>
    %cst_2 = arith.constant 1.000000e+00 : f32
    %cst_3 = arith.constant 0.000000e+00 : f32
    %13 = vector.broadcast %cst_2 : f32 to vector<16x128xf32>
    %14 = vector.broadcast %cst_3 : f32 to vector<16x128xf32>
    %15 = arith.select %12, %13, %14 : vector<16x128xi1>, vector<16x128xf32>
    %16 = arith.addf %7, %15 : vector<16x128xf32>
    %17 = vector.extract_strided_slice %0 {offsets = [0, 2], sizes = [16, 1], strides = [1, 1]} : vector<16x4xi32> to vector<16x1xi32>
    %c64_i32 = arith.constant 64 : i32
    %18 = vector.broadcast %c64_i32 : i32 to vector<16x128xi32>
    %19 = arith.subi %1, %18 : vector<16x128xi32>
    %20 = vector.broadcast %17 : vector<16x1xi32> to vector<16x128xi32>
    %21 = arith.cmpi eq, %20, %19 : vector<16x128xi32>
    %cst_4 = arith.constant 1.000000e+00 : f32
    %cst_5 = arith.constant 0.000000e+00 : f32
    %22 = vector.broadcast %cst_4 : f32 to vector<16x128xf32>
    %23 = vector.broadcast %cst_5 : f32 to vector<16x128xf32>
    %24 = arith.select %21, %22, %23 : vector<16x128xi1>, vector<16x128xf32>
    %25 = arith.addf %16, %24 : vector<16x128xf32>
    %26 = vector.extract_strided_slice %0 {offsets = [0, 3], sizes = [16, 1], strides = [1, 1]} : vector<16x4xi32> to vector<16x1xi32>
    %c96_i32 = arith.constant 96 : i32
    %27 = vector.broadcast %c96_i32 : i32 to vector<16x128xi32>
    %28 = arith.subi %1, %27 : vector<16x128xi32>
    %29 = vector.broadcast %26 : vector<16x1xi32> to vector<16x128xi32>
    %30 = arith.cmpi eq, %29, %28 : vector<16x128xi32>
    %cst_6 = arith.constant 1.000000e+00 : f32
    %cst_7 = arith.constant 0.000000e+00 : f32
    %31 = vector.broadcast %cst_6 : f32 to vector<16x128xf32>
    %32 = vector.broadcast %cst_7 : f32 to vector<16x128xf32>
    %33 = arith.select %30, %31, %32 : vector<16x128xi1>, vector<16x128xf32>
    %34 = arith.addf %25, %33 : vector<16x128xf32>
    %35 = arith.truncf %34 : vector<16x128xf32> to vector<16x128xbf16>
    %c0_8 = arith.constant 0 : index
    %c0_9 = arith.constant 0 : index
    %36 = vector.load %arg2[%c0_8, %c0_9] : memref<144x16xbf16, #tpu.memory_space<vmem>>, vector<128x16xbf16>
    %cst_10 = arith.constant dense<0.000000e+00> : vector<16x16xf32>
    %37 = tpu.matmul %35, %36, %cst_10 {dimension_numbers = #tpu.dot_dimension_numbers<[1], [0], [0], [1], [0, 0, 1, 1], [], []>} : vector<16x128xbf16>, vector<128x16xbf16>, vector<16x16xf32> -> vector<16x16xf32>
    %c0_11 = arith.constant 0 : index
    %c0_12 = arith.constant 0 : index
    %38 = vector.load %arg3[%c0_11, %c0_12] : memref<8x16xf32, #tpu.memory_space<vmem>>, vector<8x16xf32>
    %39 = vector.extract_strided_slice %37 {offsets = [0, 0], sizes = [8, 16], strides = [1, 1]} : vector<16x16xf32> to vector<8x16xf32>
    %40 = arith.addf %39, %38 : vector<8x16xf32>
    %cst_13 = arith.constant 0.000000e+00 : f32
    %41 = vector.broadcast %cst_13 : f32 to vector<8x16xf32>
    %42 = arith.maximumf %40, %41 : vector<8x16xf32>
    %cst_14 = arith.constant dense<0xFF800000> : vector<16xf32>
    %43 = vector.multi_reduction <maximumf>, %42, %cst_14 [0] : vector<8x16xf32> to vector<16xf32>
    %44 = vector.shape_cast %43 : vector<16xf32> to vector<1x16xf32>
    %45 = vector.extract_strided_slice %37 {offsets = [8, 0], sizes = [8, 16], strides = [1, 1]} : vector<16x16xf32> to vector<8x16xf32>
    %46 = arith.addf %45, %38 : vector<8x16xf32>
    %cst_15 = arith.constant 0.000000e+00 : f32
    %47 = vector.broadcast %cst_15 : f32 to vector<8x16xf32>
    %48 = arith.maximumf %46, %47 : vector<8x16xf32>
    %cst_16 = arith.constant dense<0xFF800000> : vector<16xf32>
    %49 = vector.multi_reduction <maximumf>, %48, %cst_16 [0] : vector<8x16xf32> to vector<16xf32>
    %50 = vector.shape_cast %49 : vector<16xf32> to vector<1x16xf32>
    %51 = tpu.concatenate %44, %50 in 0 : vector<1x16xf32>, vector<1x16xf32> -> vector<2x16xf32>
    %c128 = arith.constant 128 : index
    %c0_17 = arith.constant 0 : index
    %52 = vector.load %arg2[%c128, %c0_17] : memref<144x16xbf16, #tpu.memory_space<vmem>>, vector<16x16xbf16>
    %53 = arith.truncf %51 : vector<2x16xf32> to vector<2x16xbf16>
    %cst_18 = arith.constant dense<0.000000e+00> : vector<2x16xf32>
    %54 = tpu.matmul %53, %52, %cst_18 {dimension_numbers = #tpu.dot_dimension_numbers<[1], [0], [0], [1], [0, 0, 1, 1], [], []>} : vector<2x16xbf16>, vector<16x16xbf16>, vector<2x16xf32> -> vector<2x16xf32>
    %55 = vector.extract_strided_slice %54 {offsets = [0, 0], sizes = [2, 3], strides = [1, 1]} : vector<2x16xf32> to vector<2x3xf32>
    %c0_19 = arith.constant 0 : index
    %c0_20 = arith.constant 0 : index
    %56 = vector.load %arg4[%c0_19, %c0_20] : memref<2x3xf32, #tpu.memory_space<vmem>>, vector<2x3xf32>
    tpu.vector_store %arg4[%c0_19, %c0_20], %55 {strides = array<i32>} : memref<2x3xf32, #tpu.memory_space<vmem>>, vector<2x3xf32>,
    return
  }
  func.func @transform_0(%arg0: i32) -> (i32, i32) {
    %c0_i32 = arith.constant 0 : i32
    %c0_i32_0 = arith.constant 0 : i32
    return %arg0, %c0_i32 : i32, i32
  }
  func.func @transform_1(%arg0: i32) -> (i32, i32) {
    %c0_i32 = arith.constant 0 : i32
    %c0_i32_0 = arith.constant 0 : i32
    %c0_i32_1 = arith.constant 0 : i32
    return %c0_i32, %c0_i32_0 : i32, i32
  }
  func.func @transform_2(%arg0: i32) -> (i32, i32) {
    %c0_i32 = arith.constant 0 : i32
    %c0_i32_0 = arith.constant 0 : i32
    %c0_i32_1 = arith.constant 0 : i32
    return %c0_i32, %c0_i32_0 : i32, i32
  }
  func.func @transform_3(%arg0: i32) -> (i32, i32) {
    %c0_i32 = arith.constant 0 : i32
    %c0_i32_0 = arith.constant 0 : i32
    return %arg0, %c0_i32 : i32, i32
  }
}

</mosaic_0001>

<bundles_post_ra>
// kernel: lt.14
= control target key start
LH: loop header
LB: loop body
LE: loop exit
PB: predicated region body
PF: predicated region fallthrough
CT: control target
= control target key end

     0   :  { %vm7_vm0 = vcmask 31744   ;;  %s30_s8 = smov 4   ;;  %vm13_vm1 = vcmask 97344   ;;  %vm19_vm2 = vcmask 64544   ;;  %s47_s0 = inlined_call_operand.vmem [shape: s32[3,4], index: 0, kind: input, shape index: {}]   ;;  %s48_s1 = inlined_call_operand.vmem [shape: s32[12], index: 1, kind: output, shape index: {}]  }
   0x1   :  { %v4_v0 = vld [vmem:[%s47_s0] sm:$0xf]  ;;  %s29_s0 = smov 8  }
   0x2   :  { %5 = vst [vmem:[#allocation1] sm:$0xf] %v4_v0 }
   0x9   :  { %v10_v1 = vld [vmem:[#allocation1 + $0x2] sm:$0x1]   ;;  %v6_v2 = vld [vmem:[#allocation1] sm:$0x1]   ;;  %v16_v3 = vld [vmem:[#allocation1 + $0x1] sm:$0x1]  }
   0xa   :  { %11 = vrot.lane.b32.xlu0 %v10_v1, %s29_s0  ;;  %8 = vst.msk [vmem:[#allocation0] sm:$0x1] %vm7_vm0, %v6_v2  }
   0xe   :  { %17 = vrot.lane.b32.xlu0 %v16_v3, %s30_s8 }
  0x7c   :  { %v12_v4 = vpop.permute.xlu0 %11  }
  0x7d   :  { %14 = vst.msk [vmem:[#allocation0] sm:$0x1] %vm13_vm1, %v12_v4  }
  0x80   :  { %v18_v5 = vpop.permute.xlu0 %17  }
  0x81   :  { %20 = vst.msk [vmem:[#allocation0] sm:$0x1] %vm19_vm2, %v18_v5  }
  0x88   :  { %v24_v6 = vld [vmem:[#allocation0] sm:$0x1] }
  0x89   :  { %26 = vst [vmem:[%s48_s1] sm:$0x1] %v24_v6 }

// kernel: textcnn_forward.1
= control target key start
LH: loop header
LB: loop body
LE: loop exit
PB: predicated region body
PF: predicated region fallthrough
CT: control target
= control target key end

     0   :  { %v361_v1 = vmov 1   ;;  %v362_v2 = vmov 0   ;;  %v363_v5 = vmov 0.0   ;;  %s458_s0 = inlined_call_operand.vmem [shape: s32[16,4], index: 0, kind: input, shape index: {}]   ;;  %s459_s1 = inlined_call_operand.vmem [shape: bf16[144,16], index: 1, kind: input, shape index: {}]   ;;  %s460_s2 = inlined_call_operand.vmem [shape: f32[8,16], index: 2, kind: input, shape index: {}]   ;;  %s461_s3 = inlined_call_operand.hbm [shape: f32[2,3], index: 3, kind: output, shape index: {}]  }
   0x1   :  { %v16_v0 = vld [vmem:[%s458_s0] sm:$0xff]  ;;  %323 = vset.pattern.permute.xlu1 %v361_v1  ;;  %322 = vset.pattern.permute.xlu0 %v362_v2  ;;  %v17_v4 = vld [vmem:[%s458_s0 + $0x8] sm:$0xff]  ;;  %v330_v7 = vld [vmem:[%s459_s1 + $0x10] sm:$0xff]  }
   0x2   :  { %v328_v3 = vld [vmem:[%s459_s1] sm:$0xff]   ;;  %32 = vperm.xlu1 %323, %v16_v0   ;;  %21 = vperm.xlu0 %322, %v16_v0   ;;  %v329_v6 = vld [vmem:[%s459_s1 + $0x8] sm:$0xff]  }
   0x3   :  { %289 = vmatprep.subr.bf16.mxu0 %v363_v5  ;;  %309 = vmatprep.subr.bf16.mxu1 %v363_v5 }
   0x4   :  { %290 = vmatpush3.bf16.msra.mxu0 %v328_v3 }
   0x5   :  { %291 = vmatprep.subr.bf16.mxu0 %v363_v5 }
   0x6   :  { %35 = vperm.xlu1 %323, %v17_v4   ;;  %24 = vperm.xlu0 %322, %v17_v4  }
   0x8   :  { %292 = vmatpush3.bf16.msra.mxu0 %v329_v6 }
   0x9   :  { %293 = vmatprep.subr.bf16.mxu0 %v363_v5 }
   0xa   :  { %8 = vsyncpa [#allocation3], 0  ;;  %v364_v8 = vmov 2   ;;  %v331_v9 = vld [vmem:[%s459_s1 + $0x18] sm:$0xff]   ;;  %v365_v10 = vmov 3   ;;  %v332_v11 = vld [vmem:[%s459_s1 + $0x20] sm:$0xff]   ;;  %v18_v15 = vlaneseq }
   0xb   :  { %325 = vset.pattern.permute.xlu1 %v364_v8  ;;  %324 = vset.pattern.permute.xlu0 %v364_v8  ;;  %vm366_vm0 = vmmov 0   ;;  %v333_v12 = vld [vmem:[%s459_s1 + $0x28] sm:$0xff]   ;;  %v334_v13 = vld [vmem:[%s459_s1 + $0x30] sm:$0xff]   ;;  %v335_v14 = vld [vmem:[%s459_s1 + $0x38] sm:$0xff]   ;;  %vm178_vm9 = vcmask 130048   ;;  %vm195_vm10 = vcmask 1040384  }
   0xc   :  { %48 = vperm.xlu1 %325, %v17_v4   ;;  %45 = vperm.xlu0 %324, %v16_v0   ;;  %v19_v16 = vand.u32 127, %v18_v15  ;;  %v336_v43 = vld [vmem:[%s459_s1 + $0x40] sm:$0xff]   ;;  %s367_s1 = smov [#allocation2]   ;;  %vm249_vm11 = vcmask 17408  }
   0xd   :  { %294 = vmatpush3.bf16.msra.mxu0 %v330_v7  ;;  %305 = vmatprep.mubr.msk.bf16.mxu0 %vm366_vm0, %v363_v5  ;;  %v175_v44 = vld [vmem:[%s460_s2] sm:$0xff]  ;;  %s257_s2 = sshll.u32 %s367_s1, 4  ;;  %s258_s2 = int_to_ptr.vmem [resolvable:$true] %s257_s2 }
   0xe   :  { %295 = vmatprep.subr.bf16.mxu0 %v363_v5  ;;  %311 = vmatprep.mubr.msk.bf16.mxu1 %vm366_vm0, %v363_v5  ;;  %v265_v19 = vadd.s32 4294967264, %v19_v16  ;;  %v266_v22 = vadd.s32 4294967232, %v19_v16  ;;  %v267_v29 = vadd.s32 4294967200, %v19_v16  ;;  %s337_s8 = scalar_lea.vmem %s258_s2, 32  ;;  %p342_p1 = scmp.lt.s32.totalorder %s258_s2, %s258_s2 }
   0xf   :  { %310 = vmatpush3.bf16.msra.mxu1 %v336_v43  ;;  %p338_p0 = scmp.ne.s32.totalorder %s258_s2, %s337_s8  ;;  %p343_p2 = scmp.lt.s32.totalorder %s337_s8, %s337_s8 }
  0x10   :  { %326 = vset.pattern.permute.xlu1 %v365_v10  ;;  %327 = vset.pattern.permute.xlu0 %v365_v10 }
  0x11   :  { %58 = vperm.xlu1 %326, %v16_v0   ;;  %61 = vperm.xlu0 %327, %v17_v4   ;;  %p344_p3 = por %p343_p2, %p342_p1 }
  0x12   :  { %296 = vmatpush3.bf16.msra.mxu0 %v331_v9 }
  0x13   :  { %297 = vmatprep.subr.bf16.mxu0 %v363_v5  ;;  %p345_p4 = pnand %p344_p3, %p338_p0 }
  0x16   :  { %298 = vmatpush3.bf16.msra.mxu0 %v332_v11 }
  0x17   :  { %299 = vmatprep.subr.bf16.mxu0 %v363_v5 }
  0x1a   :  { %300 = vmatpush3.bf16.msra.mxu0 %v333_v12 }
  0x1b   :  { %301 = vmatprep.subr.bf16.mxu0 %v363_v5 }
  0x1e   :  { %302 = vmatpush3.bf16.msra.mxu0 %v334_v13 }
  0x1f   :  { %303 = vmatprep.subr.bf16.mxu0 %v363_v5 }
  0x22   :  { %304 = vmatpush3.bf16.msra.mxu0 %v335_v14 }
  0x81   :  { %v33_v17 = vpop.permute.xlu1 %32  ;;  %v22_v18 = vpop.permute.xlu0 %21 }
  0x82   :  { %vm37_vm1 = vcmp.eq.s32.totalorder %v33_v17, %v265_v19  ;;  %vm26_vm2 = vcmp.eq.s32.totalorder %v22_v18, %v19_v16 }
  0x83   :  { %v39_v23 = vsel %vm37_vm1, 1.0, %v363_v5  ;;  %v28_v24 = vsel %vm26_vm2, 1.0, %v363_v5 }
  0x84   :  { %v41_v32 = vadd.f32 %v39_v23, %v28_v24 }
  0x85   :  { %v36_v20 = vpop.permute.xlu1 %35  ;;  %v25_v21 = vpop.permute.xlu0 %24 }
  0x86   :  { %vm38_vm3 = vcmp.eq.s32.totalorder %v36_v20, %v265_v19  ;;  %vm27_vm4 = vcmp.eq.s32.totalorder %v25_v21, %v19_v16 }
  0x87   :  { %v40_v27 = vsel %vm38_vm3, 1.0, %v363_v5  ;;  %v29_v28 = vsel %vm27_vm4, 1.0, %v363_v5 }
  0x88   :  { %v42_v33 = vadd.f32 %v40_v27, %v29_v28 }
  0x8b   :  { %v49_v25 = vpop.permute.xlu1 %48  ;;  %v46_v26 = vpop.permute.xlu0 %45 }
  0x8c   :  { %vm51_vm5 = vcmp.eq.s32.totalorder %v49_v25, %v266_v22  ;;  %vm50_vm6 = vcmp.eq.s32.totalorder %v46_v26, %v266_v22 }
  0x8d   :  { %v53_v30 = vsel %vm51_vm5, 1.0, %v363_v5  ;;  %v52_v31 = vsel %vm50_vm6, 1.0, %v363_v5 }
  0x8e   :  { %v55_v36 = vadd.f32 %v53_v30, %v42_v33  ;;  %v54_v37 = vadd.f32 %v52_v31, %v41_v32 }
  0x90   :  { %v59_v34 = vpop.permute.xlu1 %58  ;;  %v62_v35 = vpop.permute.xlu0 %61 }
  0x91   :  { %vm63_vm7 = vcmp.eq.s32.totalorder %v59_v34, %v267_v29  ;;  %vm64_vm8 = vcmp.eq.s32.totalorder %v62_v35, %v267_v29 }
  0x92   :  { %v65_v38 = vsel %vm63_vm7, 1.0, %v363_v5  ;;  %v66_v39 = vsel %vm64_vm8, 1.0, %v363_v5 }
  0x93   :  { %v67_v40 = vadd.f32 %v65_v38, %v54_v37  ;;  %v68_v41 = vadd.f32 %v66_v39, %v55_v36 }
  0x95   :  { %v69_v42 = vpack.c.bf16 %v68_v41, %v67_v40 }
  0x97   :  { %306 = vmatmul.mubr.bf16.vlgmr.msra.gmra.mrb[0].mxu0 %v69_v42 }
 0x16a   :  { %v168_v45 = vpop.f32.mrb[0].mxu0 }
 0x16b   :  { %v176_v46 = vadd.f32 %v175_v44, %v168_v45  ;;  %v307_v47 = vpop.f32.mrb[1].mxu0 }
 0x16c   :  { %v171_v48 = vpop.f32.mrb[2].mxu0 }
 0x16d   :  { %v177_v49 = vmax.f32 %v176_v46, 0.0  ;;  %v186_v50 = vadd.f32 %v175_v44, %v171_v48  ;;  %v308_v51 = vpop.f32.mrb[3].mxu0 }
 0x16f   :  { %v179_v52 = vsel %vm178_vm9, %v177_v49, -inf  ;;  %v187_v53 = vmax.f32 %v186_v50, 0.0 }
 0x170   :  { %v180_v54 = vrot.slane %v179_v52, 4 }
 0x171   :  { %v188_v55 = vsel %vm178_vm9, %v187_v53, -inf }
 0x172   :  { %v181_v56 = vmax.f32 %v179_v52, %v180_v54  ;;  %v189_v57 = vrot.slane %v188_v55, 4 }
 0x174   :  { %v182_v58 = vrot.slane %v181_v56, 2  ;;  %v190_v59 = vmax.f32 %v188_v55, %v189_v57 }
 0x176   :  { %v183_v60 = vmax.f32 %v181_v56, %v182_v58  ;;  %v191_v61 = vrot.slane %v190_v59, 2 }
 0x178   :  { %v184_v62 = vrot.slane %v183_v60, 1  ;;  %v192_v63 = vmax.f32 %v190_v59, %v191_v61 }
 0x17a   :  { %v193_v0 = vrot.slane %v192_v63, 1  ;;  %v185_v1 = vmax.f32 %v183_v60, %v184_v62 }
 0x17c   :  { %v194_v2 = vmax.f32 %v192_v63, %v193_v0 }
 0x17e   :  { %v196_v3 = vsel %vm195_vm10, %v185_v1, %v194_v2 }
 0x17f   :  { %v199_v4 = vpack.c.bf16 %v196_v3, %v196_v3 }
 0x181   :  { %312 = vmatmul.mubr.msk.bf16.vlgmr.msra.gmra.mrb[0].mxu1 %vm178_vm9, %v199_v4 }
 0x254   :  { %v243_v5 = vpop.f32.mrb[0].mxu1 }
 0x255   :  { %250 = vst.msk [vmem:[#allocation2] sm:$0x3] %vm249_vm11, %v243_v5  ;;  %v313_v6 = vpop.f32.mrb[1].mxu1 }
 0x256   :  { %v246_v7 = vpop.f32.mrb[2].mxu1 }
 0x257   :  { %348 = shalt.err (!%p345_p4)
}
 0x258   :  { %s349_s11 = scalar_lea.hbm %s461_s3, 32 }
 0x259   :  { %p350_p5 = scmp.ne.s32.totalorder %s461_s3, %s349_s11  ;;  %p353_p6 = scmp.lt.u32.totalorder %s349_s11, %s461_s3 }
 0x25b   :  { %p355_p7 = pnand %p353_p6, %p350_p5 }
 0x25d   :  { %358 = shalt.err (!%p355_p7)
}
 0x25e   :  { %260 = dma.vmem_to_hbm [thread:$0]  %s258_s2, 32, %s461_s3, [#allocation3]   ;;  %v314_v8 = vpop.f32.mrb[3].mxu1 }
 0x25f   :  { %359 = dma.done.wait [#allocation3], 32  }
 0x260   :  { %360 = vsyncadd [#allocation3], 4294967264 }
 0x261   :  { %264 = vsyncpa [#allocation3], 1 }

</bundles_post_ra>
